<compile_context>
chip_gen: v7x
topology: tpu7x:2x2x1
jax: 0.10.0
libtpu: 0.0.40
codegen_flags: <defaults>
</compile_context>

<pallas_src>
import functools
import itertools

import jax
import jax.numpy as jnp
from jax.experimental import pallas as pl
from jax.experimental.pallas import tpu as pltpu


_NEG_SLOPE = 0.2
# Tap order matches w.reshape(Cout, Cin, 9): index t = 3*dh + dw.
_TAPS = tuple(itertools.product(range(3), range(3)))


# ----------------------------------------------------------------------------
# Fused Pallas kernel: conv1(3x3) + bias + LeakyReLU -> fused heads conv2/conv3
# One batch element per grid step.  All shifts / matmuls / epilogues in VMEM.
# ----------------------------------------------------------------------------
def _fused_encoder_kernel(x_ref, mask_ref, w1_ref, b1_ref, w23_ref, b23_ref,
                          out_ref, dec_ref, *, wp, c_out):
    # x_ref   : [1, C_in,  Sg]  zero-padded image, flat (Hp*Wp), lane-padded
    # mask_ref: [1, Sg]         1.0 at interior (valid) positions, else 0.0
    # w1_ref  : [9, C_hid, C_in]      tap-major conv1 weights
    # b1_ref  : [C_hid, 1]
    # w23_ref : [9, C_out+C_dec, C_hid]  fused head weights (out ++ dec)
    # b23_ref : [C_out+C_dec, 1]
    # out_ref : [1, C_out, Sg],  dec_ref : [1, C_dec, Sg]
    sg = x_ref.shape[-1]
    c_hid = w1_ref.shape[1]
    c_heads = w23_ref.shape[1]

    x = x_ref[0]            # [C_in, Sg]  (channels in sublanes, spatial in lanes)
    mask = mask_ref[...]    # [1, Sg]

    # ---- conv1: 9 taps == 9 constant lane shifts + small MXU dots (f32 acc) ----
    h = jnp.zeros((c_hid, sg), jnp.float32)
    for t, (dh, dw) in enumerate(_TAPS):
        delta = (dh - 1) * wp + (dw - 1)  # flat-index offset of this tap
        xt = x if delta == 0 else pltpu.roll(x, shift=(-delta) % sg, axis=1)
        h = h + jnp.dot(w1_ref[t], xt, preferred_element_type=jnp.float32)
    h = h + b1_ref[...]                         # bias, broadcast over lanes
    h = jnp.where(h >= 0.0, h, _NEG_SLOPE * h)  # LeakyReLU, f32 epilogue (VPU)
    # Zero the padding ring / lane pad so h is a properly zero-padded conv input.
    h = h * mask

    # ---- fused heads: conv2 (out) ++ conv3 (dec) on the VMEM-resident h ----
    acc = jnp.zeros((c_heads, sg), jnp.float32)
    for t, (dh, dw) in enumerate(_TAPS):
        delta = (dh - 1) * wp + (dw - 1)
        ht = h if delta == 0 else pltpu.roll(h, shift=(-delta) % sg, axis=1)
        acc = acc + jnp.dot(w23_ref[t], ht, preferred_element_type=jnp.float32)
    acc = acc + b23_ref[...]

    # Lane-dense stores (Sg is a multiple of 128).  Border columns are garbage
    # (they correspond to the padding ring) and are cropped outside the kernel.
    out_ref[0] = acc[:c_out].astype(out_ref.dtype)
    dec_ref[0] = acc[c_out:].astype(dec_ref.dtype)


# ----------------------------------------------------------------------------
# Wrapper: layout prep (pads / reshapes only — no transposes, no im2col)
# ----------------------------------------------------------------------------
@jax.jit
def discriminator_forward(params, x):
    n, c_in, height, width = x.shape
    w1, b1 = params["w1"], params["b1"]
    w2, b2 = params["w2"], params["b2"]
    w3, b3 = params["w3"], params["b3"]
    c_hid, c_out, c_dec = w1.shape[0], w2.shape[0], w3.shape[0]

    hp, wp = height + 2, width + 2
    s = hp * wp
    sg = ((s + 127) // 128) * 128   # lane-pad: aligned rolls + unmasked vst

    # NCHW -> zero-pad spatially -> flatten spatial -> lane-pad (cheap XLA pads).
    xp = jnp.pad(x, ((0, 0), (0, 0), (1, 1), (1, 1)))
    x_flat = jnp.pad(xp.reshape(n, c_in, s), ((0, 0), (0, 0), (0, sg - s)))

    # Interior mask: 1 where the flat position is a real output pixel.
    m2d = jnp.zeros((hp, wp), jnp.float32).at[1:height + 1, 1:width + 1].set(1.0)
    mask = jnp.pad(m2d.reshape(1, s), ((0, 0), (0, sg - s)))

    # Tap-major weights; the two heads are fused along Cout.
    w1_t = w1.reshape(c_hid, c_in, 9).transpose(2, 0, 1)              # [9,Ch,Ci]
    w23 = jnp.concatenate([w2, w3], axis=0)                           # [Co+Cd,Ch,3,3]
    w23_t = w23.reshape(c_out + c_dec, c_hid, 9).transpose(2, 0, 1)   # [9,Co+Cd,Ch]
    b1_c = b1.reshape(c_hid, 1)
    b23_c = jnp.concatenate([b2, b3]).reshape(c_out + c_dec, 1)

    kernel = functools.partial(_fused_encoder_kernel, wp=wp, c_out=c_out)

    out_flat, dec_flat = pl.pallas_call(
        kernel,
        out_shape=(
            jax.ShapeDtypeStruct((n, c_out, sg), x.dtype),
            jax.ShapeDtypeStruct((n, c_dec, sg), x.dtype),
        ),
        grid=(n,),
        in_specs=[
            pl.BlockSpec((1, c_in, sg), lambda i: (i, 0, 0)),
            pl.BlockSpec((1, sg), lambda i: (0, 0)),
            pl.BlockSpec((9, c_hid, c_in), lambda i: (0, 0, 0)),
            pl.BlockSpec((c_hid, 1), lambda i: (0, 0)),
            pl.BlockSpec((9, c_out + c_dec, c_hid), lambda i: (0, 0, 0)),
            pl.BlockSpec((c_out + c_dec, 1), lambda i: (0, 0)),
        ],
        out_specs=(
            pl.BlockSpec((1, c_out, sg), lambda i: (i, 0, 0)),
            pl.BlockSpec((1, c_dec, sg), lambda i: (i, 0, 0)),
        ),
        compiler_params=pltpu.CompilerParams(
            dimension_semantics=("parallel",)),
    )(x_flat, mask, w1_t, b1_c, w23_t, b23_c)

    # Crop the padding ring / lane pad.  Result is already NCHW — no transposes.
    out = out_flat[:, :, :s].reshape(n, c_out, hp, wp)[:, :, 1:height + 1, 1:width + 1]
    dec = dec_flat[:, :, :s].reshape(n, c_dec, hp, wp)[:, :, 1:height + 1, 1:width + 1]
    return out, dec


# ----------------------------------------------------------------------------
# Parameter init + pure-JAX reference (for in-script correctness check)
# ----------------------------------------------------------------------------
def init_discriminator_params(key, c_in=4, c_hid=8, c_out=8, c_dec=4):
    ks = jax.random.split(key, 6)

    def conv_init(kw, kb, cout, cin):
        fan_in = cin * 9
        w = jax.random.normal(kw, (cout, cin, 3, 3), jnp.float32) / jnp.sqrt(fan_in)
        b = 0.01 * jax.random.normal(kb, (cout,), jnp.float32)
        return w, b

    w1, b1 = conv_init(ks[0], ks[1], c_hid, c_in)
    w2, b2 = conv_init(ks[2], ks[3], c_out, c_hid)
    w3, b3 = conv_init(ks[4], ks[5], c_dec, c_hid)
    return {"w1": w1, "b1": b1, "w2": w2, "b2": b2, "w3": w3, "b3": b3}


def _conv3x3_ref(x, w, b):
    n, c, h, wd = x.shape
    xp = jnp.pad(x, ((0, 0), (0, 0), (1, 1), (1, 1)))
    out = jnp.zeros((n, w.shape[0], h, wd), jnp.float32) + b[None, :, None, None]
    for dh in range(3):
        for dw in range(3):
            out = out + jnp.einsum(
                "oc,nchw->nohw", w[:, :, dh, dw], xp[:, :, dh:dh + h, dw:dw + wd],
                precision=jax.lax.Precision.HIGHEST)
    return out


@jax.jit
def _forward_ref(params, x):
    h = _conv3x3_ref(x, params["w1"], params["b1"])
    h = jnp.where(h >= 0.0, h, _NEG_SLOPE * h)
    return (_conv3x3_ref(h, params["w2"], params["b2"]),
            _conv3x3_ref(h, params["w3"], params["b3"]))


if __name__ == "__main__":
    key = jax.random.PRNGKey(0)
    kx, kp = jax.random.split(key)
    x = jax.random.normal(kx, (2, 4, 16, 16), jnp.float32)
    params = init_discriminator_params(kp, c_in=4, c_hid=8, c_out=8, c_dec=4)

    out, dec = discriminator_forward(params, x)
    jax.block_until_ready((out, dec))

    assert out.shape == (2, 8, 16, 16), out.shape
    assert dec.shape == (2, 4, 16, 16), dec.shape
    assert jnp.all(jnp.isfinite(out)) and jnp.all(jnp.isfinite(dec))

    out_r, dec_r = _forward_ref(params, x)
    assert jnp.allclose(out, out_r, rtol=5e-2, atol=5e-2), \
        float(jnp.max(jnp.abs(out - out_r)))
    assert jnp.allclose(dec, dec_r, rtol=5e-2, atol=5e-2), \
        float(jnp.max(jnp.abs(dec - dec_r)))

    print("KERNEL_OK")
</pallas_src>

<mosaic_0001>
module attributes {stable_mosaic.version = 11 : i64} {
  func.func @_fused_encoder_kernel(%arg0: i32, %arg1: memref<1x4x384xf32, #tpu.memory_space<vmem>>, %arg2: memref<1x384xf32, #tpu.memory_space<vmem>>, %arg3: memref<9x8x4xf32, #tpu.memory_space<vmem>>, %arg4: memref<8x1xf32, #tpu.memory_space<vmem>>, %arg5: memref<9x12x8xf32, #tpu.memory_space<vmem>>, %arg6: memref<12x1xf32, #tpu.memory_space<vmem>>, %arg7: memref<1x8x384xf32, #tpu.memory_space<vmem>>, %arg8: memref<1x4x384xf32, #tpu.memory_space<vmem>>) attributes {dimension_semantics = [#tpu.dimension_semantics<parallel>], iteration_bounds = array<i64: 2>, scalar_prefetch = 0 : i64, scratch_operands = 0 : i64, tpu.core_type = #tpu.core_type<tc>, window_params = [{transform_indices = @transform_0, window_bounds = array<i64: 1, 4, 384>}, {pipeline_mode = #tpu.pipeline_mode<synchronous>, transform_indices = @transform_1, window_bounds = array<i64: 1, 384>}, {pipeline_mode = #tpu.pipeline_mode<synchronous>, transform_indices = @transform_2, window_bounds = array<i64: 9, 8, 4>}, {pipeline_mode = #tpu.pipeline_mode<synchronous>, transform_indices = @transform_3, window_bounds = array<i64: 8, 1>}, {pipeline_mode = #tpu.pipeline_mode<synchronous>, transform_indices = @transform_4, window_bounds = array<i64: 9, 12, 8>}, {pipeline_mode = #tpu.pipeline_mode<synchronous>, transform_indices = @transform_5, window_bounds = array<i64: 12, 1>}, {transform_indices = @transform_6, window_bounds = array<i64: 1, 8, 384>}, {transform_indices = @transform_7, window_bounds = array<i64: 1, 4, 384>}]} {
    %c0 = arith.constant 0 : index
    %c0_0 = arith.constant 0 : index
    %c0_1 = arith.constant 0 : index
    %0 = vector.load %arg1[%c0, %c0_0, %c0_1] : memref<1x4x384xf32, #tpu.memory_space<vmem>>, vector<1x4x384xf32>
    %1 = vector.shape_cast %0 : vector<1x4x384xf32> to vector<4x384xf32>
    %c0_2 = arith.constant 0 : index
    %c0_3 = arith.constant 0 : index
    %2 = vector.load %arg2[%c0_2, %c0_3] : memref<1x384xf32, #tpu.memory_space<vmem>>, vector<1x384xf32>
    %cst = arith.constant 0.000000e+00 : f32
    %3 = vector.broadcast %cst : f32 to vector<8x384xf32>
    %c19_i32 = arith.constant 19 : i32
    %4 = tpu.dynamic_rotate %1 by %c19_i32 dim 1 : vector<4x384xf32>, i32 -> vector<4x384xf32>
    %c0_4 = arith.constant 0 : index
    %c0_5 = arith.constant 0 : index
    %c0_6 = arith.constant 0 : index
    %5 = vector.load %arg3[%c0_4, %c0_5, %c0_6] : memref<9x8x4xf32, #tpu.memory_space<vmem>>, vector<1x8x4xf32>
    %6 = vector.shape_cast %5 : vector<1x8x4xf32> to vector<8x4xf32>
    %cst_7 = arith.constant dense<0.000000e+00> : vector<8x384xf32>
    %7 = tpu.matmul %6, %4, %cst_7 {dimension_numbers = #tpu.dot_dimension_numbers<[1], [0], [0], [1], [0, 0, 1, 1], [], []>} : vector<8x4xf32>, vector<4x384xf32>, vector<8x384xf32> -> vector<8x384xf32>
    %8 = arith.addf %3, %7 : vector<8x384xf32>
    %c18_i32 = arith.constant 18 : i32
    %9 = tpu.dynamic_rotate %1 by %c18_i32 dim 1 : vector<4x384xf32>, i32 -> vector<4x384xf32>
    %c1 = arith.constant 1 : index
    %c0_8 = arith.constant 0 : index
    %c0_9 = arith.constant 0 : index
    %10 = vector.load %arg3[%c1, %c0_8, %c0_9] : memref<9x8x4xf32, #tpu.memory_space<vmem>>, vector<1x8x4xf32>
    %11 = vector.shape_cast %10 : vector<1x8x4xf32> to vector<8x4xf32>
    %cst_10 = arith.constant dense<0.000000e+00> : vector<8x384xf32>
    %12 = tpu.matmul %11, %9, %cst_10 {dimension_numbers = #tpu.dot_dimension_numbers<[1], [0], [0], [1], [0, 0, 1, 1], [], []>} : vector<8x4xf32>, vector<4x384xf32>, vector<8x384xf32> -> vector<8x384xf32>
    %13 = arith.addf %8, %12 : vector<8x384xf32>
    %c17_i32 = arith.constant 17 : i32
    %14 = tpu.dynamic_rotate %1 by %c17_i32 dim 1 : vector<4x384xf32>, i32 -> vector<4x384xf32>
    %c2 = arith.constant 2 : index
    %c0_11 = arith.constant 0 : index
    %c0_12 = arith.constant 0 : index
    %15 = vector.load %arg3[%c2, %c0_11, %c0_12] : memref<9x8x4xf32, #tpu.memory_space<vmem>>, vector<1x8x4xf32>
    %16 = vector.shape_cast %15 : vector<1x8x4xf32> to vector<8x4xf32>
    %cst_13 = arith.constant dense<0.000000e+00> : vector<8x384xf32>
    %17 = tpu.matmul %16, %14, %cst_13 {dimension_numbers = #tpu.dot_dimension_numbers<[1], [0], [0], [1], [0, 0, 1, 1], [], []>} : vector<8x4xf32>, vector<4x384xf32>, vector<8x384xf32> -> vector<8x384xf32>
    %18 = arith.addf %13, %17 : vector<8x384xf32>
    %c1_i32 = arith.constant 1 : i32
    %19 = tpu.dynamic_rotate %1 by %c1_i32 dim 1 : vector<4x384xf32>, i32 -> vector<4x384xf32>
    %c3 = arith.constant 3 : index
    %c0_14 = arith.constant 0 : index
    %c0_15 = arith.constant 0 : index
    %20 = vector.load %arg3[%c3, %c0_14, %c0_15] : memref<9x8x4xf32, #tpu.memory_space<vmem>>, vector<1x8x4xf32>
    %21 = vector.shape_cast %20 : vector<1x8x4xf32> to vector<8x4xf32>
    %cst_16 = arith.constant dense<0.000000e+00> : vector<8x384xf32>
    %22 = tpu.matmul %21, %19, %cst_16 {dimension_numbers = #tpu.dot_dimension_numbers<[1], [0], [0], [1], [0, 0, 1, 1], [], []>} : vector<8x4xf32>, vector<4x384xf32>, vector<8x384xf32> -> vector<8x384xf32>
    %23 = arith.addf %18, %22 : vector<8x384xf32>
    %c4 = arith.constant 4 : index
    %c0_17 = arith.constant 0 : index
    %c0_18 = arith.constant 0 : index
    %24 = vector.load %arg3[%c4, %c0_17, %c0_18] : memref<9x8x4xf32, #tpu.memory_space<vmem>>, vector<1x8x4xf32>
    %25 = vector.shape_cast %24 : vector<1x8x4xf32> to vector<8x4xf32>
    %cst_19 = arith.constant dense<0.000000e+00> : vector<8x384xf32>
    %26 = tpu.matmul %25, %1, %cst_19 {dimension_numbers = #tpu.dot_dimension_numbers<[1], [0], [0], [1], [0, 0, 1, 1], [], []>} : vector<8x4xf32>, vector<4x384xf32>, vector<8x384xf32> -> vector<8x384xf32>
    %27 = arith.addf %23, %26 : vector<8x384xf32>
    %c383_i32 = arith.constant 383 : i32
    %28 = tpu.dynamic_rotate %1 by %c383_i32 dim 1 : vector<4x384xf32>, i32 -> vector<4x384xf32>
    %c5 = arith.constant 5 : index
    %c0_20 = arith.constant 0 : index
    %c0_21 = arith.constant 0 : index
    %29 = vector.load %arg3[%c5, %c0_20, %c0_21] : memref<9x8x4xf32, #tpu.memory_space<vmem>>, vector<1x8x4xf32>
    %30 = vector.shape_cast %29 : vector<1x8x4xf32> to vector<8x4xf32>
    %cst_22 = arith.constant dense<0.000000e+00> : vector<8x384xf32>
    %31 = tpu.matmul %30, %28, %cst_22 {dimension_numbers = #tpu.dot_dimension_numbers<[1], [0], [0], [1], [0, 0, 1, 1], [], []>} : vector<8x4xf32>, vector<4x384xf32>, vector<8x384xf32> -> vector<8x384xf32>
    %32 = arith.addf %27, %31 : vector<8x384xf32>
    %c367_i32 = arith.constant 367 : i32
    %33 = tpu.dynamic_rotate %1 by %c367_i32 dim 1 : vector<4x384xf32>, i32 -> vector<4x384xf32>
    %c6 = arith.constant 6 : index
    %c0_23 = arith.constant 0 : index
    %c0_24 = arith.constant 0 : index
    %34 = vector.load %arg3[%c6, %c0_23, %c0_24] : memref<9x8x4xf32, #tpu.memory_space<vmem>>, vector<1x8x4xf32>
    %35 = vector.shape_cast %34 : vector<1x8x4xf32> to vector<8x4xf32>
    %cst_25 = arith.constant dense<0.000000e+00> : vector<8x384xf32>
    %36 = tpu.matmul %35, %33, %cst_25 {dimension_numbers = #tpu.dot_dimension_numbers<[1], [0], [0], [1], [0, 0, 1, 1], [], []>} : vector<8x4xf32>, vector<4x384xf32>, vector<8x384xf32> -> vector<8x384xf32>
    %37 = arith.addf %32, %36 : vector<8x384xf32>
    %c366_i32 = arith.constant 366 : i32
    %38 = tpu.dynamic_rotate %1 by %c366_i32 dim 1 : vector<4x384xf32>, i32 -> vector<4x384xf32>
    %c7 = arith.constant 7 : index
    %c0_26 = arith.constant 0 : index
    %c0_27 = arith.constant 0 : index
    %39 = vector.load %arg3[%c7, %c0_26, %c0_27] : memref<9x8x4xf32, #tpu.memory_space<vmem>>, vector<1x8x4xf32>
    %40 = vector.shape_cast %39 : vector<1x8x4xf32> to vector<8x4xf32>
    %cst_28 = arith.constant dense<0.000000e+00> : vector<8x384xf32>
    %41 = tpu.matmul %40, %38, %cst_28 {dimension_numbers = #tpu.dot_dimension_numbers<[1], [0], [0], [1], [0, 0, 1, 1], [], []>} : vector<8x4xf32>, vector<4x384xf32>, vector<8x384xf32> -> vector<8x384xf32>
    %42 = arith.addf %37, %41 : vector<8x384xf32>
    %c365_i32 = arith.constant 365 : i32
    %43 = tpu.dynamic_rotate %1 by %c365_i32 dim 1 : vector<4x384xf32>, i32 -> vector<4x384xf32>
    %c8 = arith.constant 8 : index
    %c0_29 = arith.constant 0 : index
    %c0_30 = arith.constant 0 : index
    %44 = vector.load %arg3[%c8, %c0_29, %c0_30] : memref<9x8x4xf32, #tpu.memory_space<vmem>>, vector<1x8x4xf32>
    %45 = vector.shape_cast %44 : vector<1x8x4xf32> to vector<8x4xf32>
    %cst_31 = arith.constant dense<0.000000e+00> : vector<8x384xf32>
    %46 = tpu.matmul %45, %43, %cst_31 {dimension_numbers = #tpu.dot_dimension_numbers<[1], [0], [0], [1], [0, 0, 1, 1], [], []>} : vector<8x4xf32>, vector<4x384xf32>, vector<8x384xf32> -> vector<8x384xf32>
    %47 = arith.addf %42, %46 : vector<8x384xf32>
    %c0_32 = arith.constant 0 : index
    %c0_33 = arith.constant 0 : index
    %48 = vector.load %arg4[%c0_32, %c0_33] : memref<8x1xf32, #tpu.memory_space<vmem>>, vector<8x1xf32>
    %49 = vector.broadcast %48 : vector<8x1xf32> to vector<8x384xf32>
    %50 = arith.addf %47, %49 : vector<8x384xf32>
    %cst_34 = arith.constant 0.000000e+00 : f32
    %51 = vector.broadcast %cst_34 : f32 to vector<8x384xf32>
    %52 = arith.cmpf oge, %50, %51 : vector<8x384xf32>
    %cst_35 = arith.constant 2.000000e-01 : f32
    %53 = vector.broadcast %cst_35 : f32 to vector<8x384xf32>
    %54 = arith.mulf %53, %50 : vector<8x384xf32>
    %55 = arith.select %52, %50, %54 : vector<8x384xi1>, vector<8x384xf32>
    %56 = vector.broadcast %2 : vector<1x384xf32> to vector<8x384xf32>
    %57 = arith.mulf %55, %56 : vector<8x384xf32>
    %cst_36 = arith.constant 0.000000e+00 : f32
    %58 = vector.broadcast %cst_36 : f32 to vector<12x384xf32>
    %c19_i32_37 = arith.constant 19 : i32
    %59 = tpu.dynamic_rotate %57 by %c19_i32_37 dim 1 : vector<8x384xf32>, i32 -> vector<8x384xf32>
    %c0_38 = arith.constant 0 : index
    %c0_39 = arith.constant 0 : index
    %c0_40 = arith.constant 0 : index
    %60 = vector.load %arg5[%c0_38, %c0_39, %c0_40] : memref<9x12x8xf32, #tpu.memory_space<vmem>>, vector<1x12x8xf32>
    %61 = vector.shape_cast %60 : vector<1x12x8xf32> to vector<12x8xf32>
    %cst_41 = arith.constant dense<0.000000e+00> : vector<12x384xf32>
    %62 = tpu.matmul %61, %59, %cst_41 {dimension_numbers = #tpu.dot_dimension_numbers<[1], [0], [0], [1], [0, 0, 1, 1], [], []>} : vector<12x8xf32>, vector<8x384xf32>, vector<12x384xf32> -> vector<12x384xf32>
    %63 = arith.addf %58, %62 : vector<12x384xf32>
    %c18_i32_42 = arith.constant 18 : i32
    %64 = tpu.dynamic_rotate %57 by %c18_i32_42 dim 1 : vector<8x384xf32>, i32 -> vector<8x384xf32>
    %c1_43 = arith.constant 1 : index
    %c0_44 = arith.constant 0 : index
    %c0_45 = arith.constant 0 : index
    %65 = vector.load %arg5[%c1_43, %c0_44, %c0_45] : memref<9x12x8xf32, #tpu.memory_space<vmem>>, vector<1x12x8xf32>
    %66 = vector.shape_cast %65 : vector<1x12x8xf32> to vector<12x8xf32>
    %cst_46 = arith.constant dense<0.000000e+00> : vector<12x384xf32>
    %67 = tpu.matmul %66, %64, %cst_46 {dimension_numbers = #tpu.dot_dimension_numbers<[1], [0], [0], [1], [0, 0, 1, 1], [], []>} : vector<12x8xf32>, vector<8x384xf32>, vector<12x384xf32> -> vector<12x384xf32>
    %68 = arith.addf %63, %67 : vector<12x384xf32>
    %c17_i32_47 = arith.constant 17 : i32
    %69 = tpu.dynamic_rotate %57 by %c17_i32_47 dim 1 : vector<8x384xf32>, i32 -> vector<8x384xf32>
    %c2_48 = arith.constant 2 : index
    %c0_49 = arith.constant 0 : index
    %c0_50 = arith.constant 0 : index
    %70 = vector.load %arg5[%c2_48, %c0_49, %c0_50] : memref<9x12x8xf32, #tpu.memory_space<vmem>>, vector<1x12x8xf32>
    %71 = vector.shape_cast %70 : vector<1x12x8xf32> to vector<12x8xf32>
    %cst_51 = arith.constant dense<0.000000e+00> : vector<12x384xf32>
    %72 = tpu.matmul %71, %69, %cst_51 {dimension_numbers = #tpu.dot_dimension_numbers<[1], [0], [0], [1], [0, 0, 1, 1], [], []>} : vector<12x8xf32>, vector<8x384xf32>, vector<12x384xf32> -> vector<12x384xf32>
    %73 = arith.addf %68, %72 : vector<12x384xf32>
    %c1_i32_52 = arith.constant 1 : i32
    %74 = tpu.dynamic_rotate %57 by %c1_i32_52 dim 1 : vector<8x384xf32>, i32 -> vector<8x384xf32>
    %c3_53 = arith.constant 3 : index
    %c0_54 = arith.constant 0 : index
    %c0_55 = arith.constant 0 : index
    %75 = vector.load %arg5[%c3_53, %c0_54, %c0_55] : memref<9x12x8xf32, #tpu.memory_space<vmem>>, vector<1x12x8xf32>
    %76 = vector.shape_cast %75 : vector<1x12x8xf32> to vector<12x8xf32>
    %cst_56 = arith.constant dense<0.000000e+00> : vector<12x384xf32>
    %77 = tpu.matmul %76, %74, %cst_56 {dimension_numbers = #tpu.dot_dimension_numbers<[1], [0], [0], [1], [0, 0, 1, 1], [], []>} : vector<12x8xf32>, vector<8x384xf32>, vector<12x384xf32> -> vector<12x384xf32>
    %78 = arith.addf %73, %77 : vector<12x384xf32>
    %c4_57 = arith.constant 4 : index
    %c0_58 = arith.constant 0 : index
    %c0_59 = arith.constant 0 : index
    %79 = vector.load %arg5[%c4_57, %c0_58, %c0_59] : memref<9x12x8xf32, #tpu.memory_space<vmem>>, vector<1x12x8xf32>
    %80 = vector.shape_cast %79 : vector<1x12x8xf32> to vector<12x8xf32>
    %cst_60 = arith.constant dense<0.000000e+00> : vector<12x384xf32>
    %81 = tpu.matmul %80, %57, %cst_60 {dimension_numbers = #tpu.dot_dimension_numbers<[1], [0], [0], [1], [0, 0, 1, 1], [], []>} : vector<12x8xf32>, vector<8x384xf32>, vector<12x384xf32> -> vector<12x384xf32>
    %82 = arith.addf %78, %81 : vector<12x384xf32>
    %c383_i32_61 = arith.constant 383 : i32
    %83 = tpu.dynamic_rotate %57 by %c383_i32_61 dim 1 : vector<8x384xf32>, i32 -> vector<8x384xf32>
    %c5_62 = arith.constant 5 : index
    %c0_63 = arith.constant 0 : index
    %c0_64 = arith.constant 0 : index
    %84 = vector.load %arg5[%c5_62, %c0_63, %c0_64] : memref<9x12x8xf32, #tpu.memory_space<vmem>>, vector<1x12x8xf32>
    %85 = vector.shape_cast %84 : vector<1x12x8xf32> to vector<12x8xf32>
    %cst_65 = arith.constant dense<0.000000e+00> : vector<12x384xf32>
    %86 = tpu.matmul %85, %83, %cst_65 {dimension_numbers = #tpu.dot_dimension_numbers<[1], [0], [0], [1], [0, 0, 1, 1], [], []>} : vector<12x8xf32>, vector<8x384xf32>, vector<12x384xf32> -> vector<12x384xf32>
    %87 = arith.addf %82, %86 : vector<12x384xf32>
    %c367_i32_66 = arith.constant 367 : i32
    %88 = tpu.dynamic_rotate %57 by %c367_i32_66 dim 1 : vector<8x384xf32>, i32 -> vector<8x384xf32>
    %c6_67 = arith.constant 6 : index
    %c0_68 = arith.constant 0 : index
    %c0_69 = arith.constant 0 : index
    %89 = vector.load %arg5[%c6_67, %c0_68, %c0_69] : memref<9x12x8xf32, #tpu.memory_space<vmem>>, vector<1x12x8xf32>
    %90 = vector.shape_cast %89 : vector<1x12x8xf32> to vector<12x8xf32>
    %cst_70 = arith.constant dense<0.000000e+00> : vector<12x384xf32>
    %91 = tpu.matmul %90, %88, %cst_70 {dimension_numbers = #tpu.dot_dimension_numbers<[1], [0], [0], [1], [0, 0, 1, 1], [], []>} : vector<12x8xf32>, vector<8x384xf32>, vector<12x384xf32> -> vector<12x384xf32>
    %92 = arith.addf %87, %91 : vector<12x384xf32>
    %c366_i32_71 = arith.constant 366 : i32
    %93 = tpu.dynamic_rotate %57 by %c366_i32_71 dim 1 : vector<8x384xf32>, i32 -> vector<8x384xf32>
    %c7_72 = arith.constant 7 : index
    %c0_73 = arith.constant 0 : index
    %c0_74 = arith.constant 0 : index
    %94 = vector.load %arg5[%c7_72, %c0_73, %c0_74] : memref<9x12x8xf32, #tpu.memory_space<vmem>>, vector<1x12x8xf32>
    %95 = vector.shape_cast %94 : vector<1x12x8xf32> to vector<12x8xf32>
    %cst_75 = arith.constant dense<0.000000e+00> : vector<12x384xf32>
    %96 = tpu.matmul %95, %93, %cst_75 {dimension_numbers = #tpu.dot_dimension_numbers<[1], [0], [0], [1], [0, 0, 1, 1], [], []>} : vector<12x8xf32>, vector<8x384xf32>, vector<12x384xf32> -> vector<12x384xf32>
    %97 = arith.addf %92, %96 : vector<12x384xf32>
    %c365_i32_76 = arith.constant 365 : i32
    %98 = tpu.dynamic_rotate %57 by %c365_i32_76 dim 1 : vector<8x384xf32>, i32 -> vector<8x384xf32>
    %c8_77 = arith.constant 8 : index
    %c0_78 = arith.constant 0 : index
    %c0_79 = arith.constant 0 : index
    %99 = vector.load %arg5[%c8_77, %c0_78, %c0_79] : memref<9x12x8xf32, #tpu.memory_space<vmem>>, vector<1x12x8xf32>
    %100 = vector.shape_cast %99 : vector<1x12x8xf32> to vector<12x8xf32>
    %cst_80 = arith.constant dense<0.000000e+00> : vector<12x384xf32>
    %101 = tpu.matmul %100, %98, %cst_80 {dimension_numbers = #tpu.dot_dimension_numbers<[1], [0], [0], [1], [0, 0, 1, 1], [], []>} : vector<12x8xf32>, vector<8x384xf32>, vector<12x384xf32> -> vector<12x384xf32>
    %102 = arith.addf %97, %101 : vector<12x384xf32>
    %c0_81 = arith.constant 0 : index
    %c0_82 = arith.constant 0 : index
    %103 = vector.load %arg6[%c0_81, %c0_82] : memref<12x1xf32, #tpu.memory_space<vmem>>, vector<12x1xf32>
    %104 = vector.broadcast %103 : vector<12x1xf32> to vector<12x384xf32>
    %105 = arith.addf %102, %104 : vector<12x384xf32>
    %106 = vector.extract_strided_slice %105 {offsets = [0, 0], sizes = [8, 384], strides = [1, 1]} : vector<12x384xf32> to vector<8x384xf32>
    %c0_83 = arith.constant 0 : index
    %c0_84 = arith.constant 0 : index
    %c0_85 = arith.constant 0 : index
    %107 = vector.load %arg7[%c0_83, %c0_84, %c0_85] : memref<1x8x384xf32, #tpu.memory_space<vmem>>, vector<1x8x384xf32>
    %108 = vector.shape_cast %107 : vector<1x8x384xf32> to vector<8x384xf32>
    %109 = vector.shape_cast %106 : vector<8x384xf32> to vector<1x8x384xf32>
    tpu.vector_store %arg7[%c0_83, %c0_84, %c0_85], %109 {strides = array<i32>} : memref<1x8x384xf32, #tpu.memory_space<vmem>>, vector<1x8x384xf32>,
    %110 = vector.extract_strided_slice %105 {offsets = [8, 0], sizes = [4, 384], strides = [1, 1]} : vector<12x384xf32> to vector<4x384xf32>
    %c0_86 = arith.constant 0 : index
    %c0_87 = arith.constant 0 : index
    %c0_88 = arith.constant 0 : index
    %111 = vector.load %arg8[%c0_86, %c0_87, %c0_88] : memref<1x4x384xf32, #tpu.memory_space<vmem>>, vector<1x4x384xf32>
    %112 = vector.shape_cast %111 : vector<1x4x384xf32> to vector<4x384xf32>
    %113 = vector.shape_cast %110 : vector<4x384xf32> to vector<1x4x384xf32>
    tpu.vector_store %arg8[%c0_86, %c0_87, %c0_88], %113 {strides = array<i32>} : memref<1x4x384xf32, #tpu.memory_space<vmem>>, vector<1x4x384xf32>,
    return
  }
  func.func @transform_0(%arg0: i32) -> (i32, i32, i32) {
    %c0_i32 = arith.constant 0 : i32
    %c0_i32_0 = arith.constant 0 : i32
    %c0_i32_1 = arith.constant 0 : i32
    return %arg0, %c0_i32, %c0_i32_0 : i32, i32, i32
  }
  func.func @transform_1(%arg0: i32) -> (i32, i32) {
    %c0_i32 = arith.constant 0 : i32
    %c0_i32_0 = arith.constant 0 : i32
    %c0_i32_1 = arith.constant 0 : i32
    return %c0_i32, %c0_i32_0 : i32, i32
  }
  func.func @transform_2(%arg0: i32) -> (i32, i32, i32) {
    %c0_i32 = arith.constant 0 : i32
    %c0_i32_0 = arith.constant 0 : i32
    %c0_i32_1 = arith.constant 0 : i32
    %c0_i32_2 = arith.constant 0 : i32
    return %c0_i32, %c0_i32_0, %c0_i32_1 : i32, i32, i32
  }
  func.func @transform_3(%arg0: i32) -> (i32, i32) {
    %c0_i32 = arith.constant 0 : i32
    %c0_i32_0 = arith.constant 0 : i32
    %c0_i32_1 = arith.constant 0 : i32
    return %c0_i32, %c0_i32_0 : i32, i32
  }
  func.func @transform_4(%arg0: i32) -> (i32, i32, i32) {
    %c0_i32 = arith.constant 0 : i32
    %c0_i32_0 = arith.constant 0 : i32
    %c0_i32_1 = arith.constant 0 : i32
    %c0_i32_2 = arith.constant 0 : i32
    return %c0_i32, %c0_i32_0, %c0_i32_1 : i32, i32, i32
  }
  func.func @transform_5(%arg0: i32) -> (i32, i32) {
    %c0_i32 = arith.constant 0 : i32
    %c0_i32_0 = arith.constant 0 : i32
    %c0_i32_1 = arith.constant 0 : i32
    return %c0_i32, %c0_i32_0 : i32, i32
  }
  func.func @transform_6(%arg0: i32) -> (i32, i32, i32) {
    %c0_i32 = arith.constant 0 : i32
    %c0_i32_0 = arith.constant 0 : i32
    %c0_i32_1 = arith.constant 0 : i32
    return %arg0, %c0_i32, %c0_i32_0 : i32, i32, i32
  }
  func.func @transform_7(%arg0: i32) -> (i32, i32, i32) {
    %c0_i32 = arith.constant 0 : i32
    %c0_i32_0 = arith.constant 0 : i32
    %c0_i32_1 = arith.constant 0 : i32
    return %arg0, %c0_i32, %c0_i32_0 : i32, i32, i32
  }
}

</mosaic_0001>

<bundles_post_ra>
// kernel: discriminator_forward.1
= control target key start
LH: loop header
LB: loop body
LE: loop exit
PB: predicated region body
PF: predicated region fallthrough
CT: control target
= control target key end

     0   :  { %s3907_s24 = smov 0   ;;  %s4388_s0 = inlined_call_operand.vmem [shape: f32[2,4,384], index: 0, kind: input, shape index: {}]   ;;  %s4389_s1 = inlined_call_operand.vmem [shape: f32[1,384], index: 1, kind: input, shape index: {}]   ;;  %s4390_s2 = inlined_call_operand.vmem [shape: f32[9,8,4], index: 2, kind: input, shape index: {}]   ;;  %s4391_s3 = inlined_call_operand.vmem [shape: f32[8,1], index: 3, kind: input, shape index: {}]   ;;  %s4392_s4 = inlined_call_operand.vmem [shape: f32[9,12,8], index: 4, kind: input, shape index: {}]   ;;  %s4393_s5 = inlined_call_operand.vmem [shape: f32[12,1], index: 5, kind: input, shape index: {}]   ;;  %s4394_s6 = inlined_call_operand.vmem [shape: f32[2,8,384], index: 6, kind: output, shape index: {0}]   ;;  %s4395_s7 = inlined_call_operand.vmem [shape: f32[2,4,384], index: 7, kind: output, shape index: {1}]  }
   0x1 LB: > { %s3510_s25 = sadd.s32 4294967295, %s3854_s24   ;;  %p3514_p0 = scmp.ge.s32.totalorder %s3854_s24, 1  ;;  %s3854_s24 = sphi %s3907_s24, %s18_s24  }
   0x2   : > { %p240_p1 = scmp.lt.s32.totalorder %s3854_s24, 3 }
   0x4   : > { %p241_p2 = pnand %p3514_p0, %p240_p1 }
   0x5   : > { %p277_p3 = scmp.lt.s32.totalorder (!%p241_p2), %s3510_s25, 1  ;;  %v3856_v0 = vmov (!%p241_p2), 0.0   ;;  %vm3857_vm0 = vmmov (!%p241_p2), 0   ;;  %s3858_s30 = smov (!%p241_p2), 18   ;;  %v1795_v4 = vld [vmem:[%s4391_s3] sm:$0xff] (!%p241_p2)  ;;  %v3866_v5 = vmov (!%p241_p2), 0   ;;  %v305_v6 = vlaneseq (!%p241_p2) }
   0x6   : > { %244 = sbr.rel (%p241_p2) target bundleno = 837 (0x345), region = 44  ;;  %3670 = vmatprep.subr.mxu1 (!%p241_p2), %v3856_v0  ;;  %402 = vmatprep.mubr.f32.mxu0 (!%p241_p2), %v3856_v0  ;;  %s3859_s8 = smov (!%p241_p2), 19   ;;  %vm328_vm2 = vcmask (!%p241_p2), 1043456   ;;  %v3518_v14 = vld [vmem:[%s4390_s2 + $0x8] sm:$0xff] (!%p241_p2)  ;;  %vm324_vm3 = vcmask (!%p241_p2), 31744   ;;  %v311_v21 = vld [vmem:[%s4390_s2] sm:$0xff] (!%p241_p2) }
   0x7   : > { %3672 = vmatprep.mubr.msk.f32.mxu1 (!%p241_p2), %vm3857_vm0, %v3856_v0  ;;  %s3860_s9 = smov (!%p241_p2), 17   ;;  %s3861_s10 = smov (!%p241_p2), 1   ;;  %3845 = vset.pattern.permute.xlu0 (!%p241_p2), %v3866_v5  ;;  %v3987_v7 = vand.u32 (!%p241_p2), 127, %v305_v6  ;;  %v3529_v29 = vld [vmem:[%s4390_s2 + $0x10] sm:$0xff] (!%p241_p2)  ;;  %v3535_v35 = vld [vmem:[%s4390_s2 + $0x18] sm:$0xff] (!%p241_p2)  ;;  %v3541_v38 = vld [vmem:[%s4390_s2 + $0x20] sm:$0xff] (!%p241_p2) }
   0x8   : > { %s3862_s11 = smov (!%p241_p2), 127   ;;  %s3863_s12 = smov (!%p241_p2), 111   ;;  %3846 = vset.pattern.permute.xlu1 (!%p241_p2), %v3866_v5  ;;  %v3547_v41 = vld [vmem:[%s4390_s2 + $0x28] sm:$0xff] (!%p241_p2)  ;;  %v3553_v46 = vld [vmem:[%s4390_s2 + $0x30] sm:$0xff] (!%p241_p2)  ;;  %v3559_v54 = vld [vmem:[%s4390_s2 + $0x38] sm:$0xff] (!%p241_p2)  ;;  %vm1855_vm14 = vcmask (!%p241_p2), 64512  }
   0x9   : > { %s3864_s13 = smov (!%p241_p2), 110   ;;  %s3865_s14 = smov (!%p241_p2), 109   ;;  %vm318_vm1 = vcmp.lt.s32.totalorder (!%p241_p2), %v3987_v7, 18  ;;  %vm307_vm4 = vcmp.lt.s32.totalorder (!%p241_p2), %v3987_v7, 19  ;;  %vm638_vm5 = vcmp.lt.s32.totalorder (!%p241_p2), %v3987_v7, 17  ;;  %vm806_vm6 = vcmp.lt.s32.totalorder (!%p241_p2), %v3987_v7, 1 }
   0xa   : > { %vm1129_vm7 = vcmp.lt.s32.totalorder (!%p241_p2), %v3987_v7, 127  ;;  %vm1297_vm8 = vcmp.lt.s32.totalorder (!%p241_p2), %v3987_v7, 111  ;;  %vm1465_vm9 = vcmp.lt.s32.totalorder (!%p241_p2), %v3987_v7, 110  ;;  %vm1633_vm10 = vcmp.lt.s32.totalorder (!%p241_p2), %v3987_v7, 109  ;;  %v3565_v58 = vld [vmem:[%s4390_s2 + $0x40] sm:$0xff] (!%p241_p2) }
   0xd   : > { %s4397_s25 = smov (!%p277_p3, %s3510_s25), 1 }
   0xe   : > { %s3824_s26 = smul.u32 12, %s4397_s25 }
  0x10   : > { %s281_s29 = scalar_lea.vmem %s4388_s0, %s3824_s26 }
  0x11   : > { %v3927_v1 = vld [vmem:[%s281_s29 + $0x8] sm:$0xf]  ;;  %v3929_v2 = vld [vmem:[%s281_s29] sm:$0xff] }
  0x12   : > { %316 = vrot.lane.b32.xlu1 %v3927_v1, %s3858_s30  ;;  %312 = vrot.lane.b32.xlu0 %v3929_v2, %s3858_s30  ;;  %v3937_v3 = vcombine.high %v3929_v2, %v3929_v2 }
  0x16   : > { %299 = vrot.lane.b32.xlu1 %v3929_v2, %s3859_s8  ;;  %314 = vrot.lane.b32.xlu0 %v3937_v3, %s3858_s30 }
  0x1a   : > { %303 = vrot.lane.b32.xlu1 %v3927_v1, %s3859_s8  ;;  %301 = vrot.lane.b32.xlu0 %v3937_v3, %s3859_s8 }
  0x1e   : > { %632 = vrot.lane.b32.xlu0 %v3929_v2, %s3860_s9  ;;  %634 = vrot.lane.b32.xlu1 %v3937_v3, %s3860_s9 }
  0x22   : > { %636 = vrot.lane.b32.xlu0 %v3927_v1, %s3860_s9  ;;  %800 = vrot.lane.b32.xlu1 %v3929_v2, %s3861_s10 }
  0x26   : > { %804 = vrot.lane.b32.xlu1 %v3927_v1, %s3861_s10  ;;  %802 = vrot.lane.b32.xlu0 %v3937_v3, %s3861_s10 }
  0x2a   : > { %1127 = vrot.lane.b32.xlu1 %v3927_v1, %s3862_s11  ;;  %1125 = vrot.lane.b32.xlu0 %v3937_v3, %s3862_s11 }
  0x2e   : > { %1293 = vrot.lane.b32.xlu1 %v3937_v3, %s3863_s12  ;;  %1123 = vrot.lane.b32.xlu0 %v3929_v2, %s3862_s11 }
  0x32   : > { %1291 = vrot.lane.b32.xlu1 %v3929_v2, %s3863_s12  ;;  %1295 = vrot.lane.b32.xlu0 %v3927_v1, %s3863_s12 }
  0x36   : > { %1463 = vrot.lane.b32.xlu1 %v3927_v1, %s3864_s13  ;;  %1461 = vrot.lane.b32.xlu0 %v3937_v3, %s3864_s13 }
  0x3a   : > { %1629 = vrot.lane.b32.xlu1 %v3937_v3, %s3865_s14  ;;  %1459 = vrot.lane.b32.xlu0 %v3929_v2, %s3864_s13 }
  0x3e   : > { %1627 = vrot.lane.b32.xlu1 %v3929_v2, %s3865_s14  ;;  %1631 = vrot.lane.b32.xlu0 %v3927_v1, %s3865_s14 }
  0x42   : > { %1798 = vperm.xlu0 %3845, %v1795_v4  }
  0x84   : > { %v317_v8 = vpop.permute.xlu1 %316  ;;  %v313_v9 = vpop.permute.xlu0 %312 }
  0x85   : > { %v321_v15 = vsel %vm318_vm1, %v317_v8, %v313_v9 }
  0x88   : > { %v300_v10 = vpop.permute.xlu1 %299  ;;  %v315_v11 = vpop.permute.xlu0 %314 }
  0x89   : > { %v320_v12 = vsel %vm318_vm1, %v313_v9, %v315_v11  ;;  %v319_v13 = vsel %vm318_vm1, %v315_v11, %v317_v8 }
  0x8a   : > { %3519 = vmatprep.subr.msk.mxu0 %vm328_vm2, %v320_v12  ;;  %3671 = vmatpush3.msk.msra.mxu1 %vm328_vm2, %v319_v13 }
  0x8b   : > { %3520 = vmatpush1.msk.msra.mxu0 %vm328_vm2, %v321_v15  ;;  %3675 = vmatprep.subr.mxu1 %v3856_v0 }
  0x8c   : > { %v304_v16 = vpop.permute.xlu1 %303  ;;  %3521 = vmatmul.mubr.msk.f32.vlgmr.msra.gmra.mrb[0].mxu0 %vm324_vm3, %v3518_v14  ;;  %v302_v17 = vpop.permute.xlu0 %301  ;;  %3673 = vmatmul.mubr.msk.f32.vlgmr.msra.gmra.mrb[0].mxu1 %vm324_vm3, %v3518_v14 }
  0x8d   : > { %v310_v18 = vsel %vm307_vm4, %v304_v16, %v300_v10  ;;  %v308_v19 = vsel %vm307_vm4, %v302_v17, %v304_v16  ;;  %v309_v20 = vsel %vm307_vm4, %v300_v10, %v302_v17  ;;  %555 = vmatprep.mubr.f32.mxu0 %v3856_v0  ;;  %3677 = vmatprep.mubr.msk.f32.mxu1 %vm3857_vm0, %v3856_v0 }
  0x8e   : > { %3524 = vmatprep.subr.msk.mxu0 %vm328_vm2, %v309_v20  ;;  %3676 = vmatpush3.msk.msra.mxu1 %vm328_vm2, %v308_v19 }
  0x8f   : > { %3525 = vmatpush1.msk.msra.mxu0 %vm328_vm2, %v310_v18  ;;  %3680 = vmatprep.subr.mxu1 %v3856_v0 }
  0x90   : > { %v633_v22 = vpop.permute.xlu0 %632  ;;  %v635_v23 = vpop.permute.xlu1 %634  ;;  %3678 = vmatmul.mubr.msk.f32.vlgmr.msra.gmra.mrb[2].mxu1 %vm324_vm3, %v311_v21 }
  0x91   : > { %v640_v24 = vsel %vm638_vm5, %v633_v22, %v635_v23  ;;  %3682 = vmatprep.mubr.msk.f32.mxu1 %vm3857_vm0, %v3856_v0 }
  0x92   : > { %3530 = vmatprep.subr.msk.mxu0 %vm328_vm2, %v640_v24 }
  0x94   : > { %3526 = vmatmul.mubr.msk.f32.vlgmr.msra.gmra.mrb[0].mxu0 %vm324_vm3, %v311_v21  ;;  %v637_v25 = vpop.permute.xlu0 %636  ;;  %v801_v26 = vpop.permute.xlu1 %800 }
  0x95   : > { %v639_v27 = vsel %vm638_vm5, %v635_v23, %v637_v25  ;;  %v641_v28 = vsel %vm638_vm5, %v637_v25, %v633_v22  ;;  %720 = vmatprep.mubr.f32.mxu0 %v3856_v0  ;;  %v1815_v25 = vshrl.u32 %v305_v6, 7 }
  0x96   : > { %3531 = vmatpush1.msk.msra.mxu0 %vm328_vm2, %v641_v28  ;;  %3681 = vmatpush3.msk.msra.mxu1 %vm328_vm2, %v639_v27 }
  0x97   : > { %3685 = vmatprep.subr.mxu1 %v3856_v0  ;;  %3683 = vmatmul.mubr.msk.f32.vlgmr.msra.gmra.mrb[4].mxu1 %vm324_vm3, %v3529_v29  ;;  %v1816_v6 = vsub.s32 0, %v1815_v25 }
  0x98   : > { %v805_v30 = vpop.permute.xlu1 %804  ;;  %v803_v31 = vpop.permute.xlu0 %802  ;;  %3687 = vmatprep.mubr.msk.f32.mxu1 %vm3857_vm0, %v3856_v0 }
  0x99   : > { %v807_v32 = vsel %vm806_vm6, %v803_v31, %v805_v30  ;;  %v808_v33 = vsel %vm806_vm6, %v801_v26, %v803_v31  ;;  %v809_v34 = vsel %vm806_vm6, %v805_v30, %v801_v26 }
  0x9a   : > { %3536 = vmatprep.subr.msk.mxu0 %vm328_vm2, %v808_v33  ;;  %3686 = vmatpush3.msk.msra.mxu1 %vm328_vm2, %v807_v32  ;;  %v294_v32 = vld [vmem:[%s4389_s1] sm:$0x7] }
  0x9b   : > { %3688 = vmatmul.mubr.msk.f32.vlgmr.msra.gmra.mrb[6].mxu1 %vm324_vm3, %v3535_v35  ;;  %3690 = vmatprep.subr.mxu1 %v3856_v0 }
  0x9c   : > { %3532 = vmatmul.mubr.msk.f32.vlgmr.msra.gmra.mrb[0].mxu0 %vm324_vm3, %v3529_v29  ;;  %v1128_v36 = vpop.permute.xlu1 %1127  ;;  %v1126_v37 = vpop.permute.xlu0 %1125  ;;  %3691 = vmatpush3.msk.msra.mxu1 %vm328_vm2, %v3927_v1  ;;  %v1824_v29 = vsub.s32 2, %v1815_v25 }
  0x9d   : > { %3537 = vmatpush1.msk.msra.mxu0 %vm328_vm2, %v809_v34  ;;  %888 = vmatprep.mubr.f32.mxu0 %v3856_v0  ;;  %v1130_v43 = vsel %vm1129_vm7, %v1126_v37, %v1128_v36 }
  0x9e   : > { %3542 = vmatprep.subr.msk.mxu0 %vm328_vm2, %v3937_v3  ;;  %3692 = vmatprep.mubr.msk.f32.mxu1 %vm3857_vm0, %v3856_v0 }
  0x9f   : > { %3693 = vmatmul.mubr.msk.f32.vlgmr.msra.gmra.mrb[8].mxu1 %vm324_vm3, %v3541_v38  ;;  %3695 = vmatprep.subr.mxu1 %v3856_v0 }
  0xa0   : > { %v1294_v39 = vpop.permute.xlu1 %1293  ;;  %v1124_v40 = vpop.permute.xlu0 %1123  ;;  %3697 = vmatprep.mubr.msk.f32.mxu1 %vm3857_vm0, %v3856_v0 }
  0xa1   : > { %v1132_v42 = vsel %vm1129_vm7, %v1128_v36, %v1124_v40  ;;  %v1131_v50 = vsel %vm1129_vm7, %v1124_v40, %v1126_v37 }
  0xa2   : > { %3696 = vmatpush3.msk.msra.mxu1 %vm328_vm2, %v1132_v42 }
  0xa3   : > { %3698 = vmatmul.mubr.msk.f32.vlgmr.msra.gmra.mrb[10].mxu1 %vm324_vm3, %v3547_v41  ;;  %3700 = vmatprep.subr.mxu1 %v3856_v0 }
  0xa4   : > { %3538 = vmatmul.mubr.msk.f32.vlgmr.msra.gmra.mrb[0].mxu0 %vm324_vm3, %v3535_v35  ;;  %v1292_v44 = vpop.permute.xlu1 %1291  ;;  %v1296_v45 = vpop.permute.xlu0 %1295  ;;  %3702 = vmatprep.mubr.msk.f32.mxu1 %vm3857_vm0, %v3856_v0  ;;  %v1825_v35 = vrot.slane %v294_v32, %v1824_v29 }
  0xa5   : > { %3543 = vmatpush1.msk.msra.mxu0 %vm328_vm2, %v3929_v2  ;;  %1043 = vmatprep.mubr.f32.mxu0 %v3856_v0  ;;  %v1300_v47 = vsel %vm1297_vm8, %v1296_v45, %v1292_v44  ;;  %v1298_v51 = vsel %vm1297_vm8, %v1294_v39, %v1296_v45  ;;  %v1299_v60 = vsel %vm1297_vm8, %v1292_v44, %v1294_v39  ;;  %v1820_v39 = vsub.s32 1, %v1815_v25 }
  0xa6   : > { %3548 = vmatprep.subr.msk.mxu0 %vm328_vm2, %v1130_v43  ;;  %3701 = vmatpush3.msk.msra.mxu1 %vm328_vm2, %v1300_v47  ;;  %v1817_v43 = vrot.slane %v294_v32, %v1816_v6 }
  0xa7   : > { %3703 = vmatmul.mubr.msk.f32.vlgmr.msra.gmra.mrb[12].mxu1 %vm324_vm3, %v3553_v46  ;;  %3705 = vmatprep.subr.mxu1 %v3856_v0 }
  0xa8   : > { %v1464_v48 = vpop.permute.xlu1 %1463  ;;  %v1462_v49 = vpop.permute.xlu0 %1461  ;;  %3707 = vmatprep.mubr.msk.f32.mxu1 %vm3857_vm0, %v3856_v0 }
  0xa9   : > { %v1466_v61 = vsel %vm1465_vm9, %v1462_v49, %v1464_v48 }
  0xac   : > { %3544 = vmatmul.mubr.msk.f32.vlgmr.msra.gmra.mrb[0].mxu0 %vm324_vm3, %v3541_v38  ;;  %v1630_v52 = vpop.permute.xlu1 %1629  ;;  %v1460_v53 = vpop.permute.xlu0 %1459 }
  0xad   : > { %3549 = vmatpush1.msk.msra.mxu0 %vm328_vm2, %v1131_v50  ;;  %1211 = vmatprep.mubr.f32.mxu0 %v3856_v0  ;;  %v1468_v55 = vsel %vm1465_vm9, %v1464_v48, %v1460_v53  ;;  %v1467_v62 = vsel %vm1465_vm9, %v1460_v53, %v1462_v49  ;;  %v3395_v53 = vld [vmem:[%s4393_s5] sm:$0xff] }
  0xae   : > { %3554 = vmatprep.subr.msk.mxu0 %vm328_vm2, %v1298_v51  ;;  %3706 = vmatpush3.msk.msra.mxu1 %vm328_vm2, %v1468_v55 }
  0xaf   : > { %3708 = vmatmul.mubr.msk.f32.vlgmr.msra.gmra.mrb[14].mxu1 %vm324_vm3, %v3559_v54  ;;  %3710 = vmatprep.subr.mxu1 %v3856_v0 }
  0xb0   : > { %v1628_v56 = vpop.permute.xlu1 %1627  ;;  %v1632_v57 = vpop.permute.xlu0 %1631  ;;  %3712 = vmatprep.mubr.msk.f32.mxu1 %vm3857_vm0, %v3856_v0 }
  0xb1   : > { %v1636_v59 = vsel %vm1633_vm10, %v1632_v57, %v1628_v56  ;;  %v1634_v63 = vsel %vm1633_vm10, %v1630_v52, %v1632_v57  ;;  %v1635_v1 = vsel %vm1633_vm10, %v1628_v56, %v1630_v52  ;;  %v3396_v52 = vld [vmem:[%s4393_s5 + $0x8] sm:$0xf] }
  0xb2   : > { %3711 = vmatpush3.msk.msra.mxu1 %vm328_vm2, %v1636_v59 }
  0xb3   : > { %3713 = vmatmul.mubr.msk.f32.vlgmr.msra.gmra.mrb[16].mxu1 %vm324_vm3, %v3565_v58 }
  0xb4   : > { %3550 = vmatmul.mubr.msk.f32.vlgmr.msra.gmra.mrb[0].mxu0 %vm324_vm3, %v3547_v41  ;;  %1926 = vmatprep.mubr.f32.mxu1 %v3856_v0 }
  0xb5   : > { %3555 = vmatpush1.msk.msra.mxu0 %vm328_vm2, %v1299_v60  ;;  %1379 = vmatprep.mubr.f32.mxu0 %v3856_v0  ;;  %v3571_v60 = vld [vmem:[%s4392_s4 + $0x10] sm:$0xff] }
  0xb6   : > { %3560 = vmatprep.subr.msk.mxu0 %vm328_vm2, %v1466_v61 }
  0xbc   : > { %3556 = vmatmul.mubr.msk.f32.vlgmr.msra.gmra.mrb[0].mxu0 %vm324_vm3, %v3553_v46  ;;  %v1821_v46 = vrot.slane %v294_v32, %v1820_v39 }
  0xbd   : > { %3561 = vmatpush1.msk.msra.mxu0 %vm328_vm2, %v1467_v62  ;;  %1547 = vmatprep.mubr.f32.mxu0 %v3856_v0 }
  0xbe   : > { %3566 = vmatprep.subr.msk.mxu0 %vm328_vm2, %v1634_v63 }
  0xc1   : > { %v1799_v30 = vpop.permute.xlu0 %1798 }
  0xc4   : > { %3562 = vmatmul.mubr.msk.f32.vlgmr.msra.gmra.mrb[0].mxu0 %vm324_vm3, %v3559_v54 }
  0xc5   : > { %3567 = vmatpush1.msk.msra.mxu0 %vm328_vm2, %v1635_v1  ;;  %1715 = vmatprep.mubr.f32.mxu0 %v3856_v0 }
  0xcc   : > { %3568 = vmatmul.mubr.msk.f32.vlgmr.msra.gmra.mrb[0].mxu0 %vm324_vm3, %v3565_v58 }
  0xcd   : > { %2254 = vmatprep.mubr.f32.mxu0 %v3856_v0 }
 0x15f   : > { %v475_v2 = vpop.f32.mrb[0].mxu1 }
 0x160   : > { %v3674_v3 = vpop.f32.mrb[1].mxu1 }
 0x163   : > { %v628_v4 = vpop.f32.mrb[2].mxu1 }
 0x164   : > { %v629_v5 = vadd.f32 %v628_v4, %v475_v2  ;;  %v3679_v8 = vpop.f32.mrb[3].mxu1  ;;  %v3572_v2 = vld [vmem:[%s4392_s4 + $0x18] sm:$0xf] }
 0x16a   : > { %v793_v9 = vpop.f32.mrb[4].mxu1 }
 0x16b   : > { %v799_v10 = vadd.f32 %v793_v9, %v629_v5  ;;  %v3684_v11 = vpop.f32.mrb[5].mxu1 }
 0x16e   : > { %v961_v12 = vpop.f32.mrb[6].mxu1 }
 0x16f   : > { %v967_v13 = vadd.f32 %v961_v12, %v799_v10  ;;  %v3689_v14 = vpop.f32.mrb[7].mxu1  ;;  %v1841_v12 = vld [vmem:[%s4392_s4] sm:$0xff] }
 0x172   : > { %v1116_v15 = vpop.f32.mrb[8].mxu1 }
 0x173   : > { %v1122_v16 = vadd.f32 %v1116_v15, %v967_v13  ;;  %v3694_v17 = vpop.f32.mrb[9].mxu1  ;;  %v3581_v13 = vld [vmem:[%s4392_s4 + $0x20] sm:$0xff] }
 0x176   : > { %v1284_v18 = vpop.f32.mrb[10].mxu1 }
 0x177   : > { %v1290_v19 = vadd.f32 %v1284_v18, %v1122_v16  ;;  %v3699_v20 = vpop.f32.mrb[11].mxu1  ;;  %v1842_v18 = vld [vmem:[%s4392_s4 + $0x8] sm:$0xf] }
 0x17a   : > { %v1452_v21 = vpop.f32.mrb[12].mxu1 }
 0x17b   : > { %v1458_v22 = vadd.f32 %v1452_v21, %v1290_v19  ;;  %v3704_v23 = vpop.f32.mrb[13].mxu1  ;;  %v3582_v19 = vld [vmem:[%s4392_s4 + $0x28] sm:$0xf] }
 0x17c   : > { %v3587_v23 = vld [vmem:[%s4392_s4 + $0x30] sm:$0xff] }
 0x182   : > { %v1620_v24 = vpop.f32.mrb[14].mxu1 }
 0x183   : > { %v1626_v26 = vadd.f32 %v1620_v24, %v1458_v22  ;;  %v3709_v27 = vpop.f32.mrb[15].mxu1 }
 0x186   : > { %v1788_v28 = vpop.f32.mrb[16].mxu1 }
 0x187   : > { %v1794_v31 = vadd.f32 %v1788_v28, %v1626_v26  ;;  %v3714_v33 = vpop.f32.mrb[17].mxu1  ;;  %v3588_v28 = vld [vmem:[%s4392_s4 + $0x38] sm:$0xf] }
 0x189   : > { %v1803_v34 = vadd.f32 %v1799_v30, %v1794_v31 }
 0x18b   : > { %vm1806_vm11 = vcmp.ge.f32.partialorder %v1803_v34, 0.0  ;;  %v1809_v36 = vmul.f32 0.2, %v1803_v34 }
 0x18d   : > { %v1812_v37 = vsel %vm1806_vm11, %v1803_v34, %v1809_v36 }
 0x18e   : > { %v4158_v38 = vmul.f32 %v1825_v35, %v1812_v37  ;;  %v3594_v35 = vld [vmem:[%s4392_s4 + $0x48] sm:$0xf]  ;;  %v3599_v37 = vld [vmem:[%s4392_s4 + $0x50] sm:$0xff] }
 0x190   : > { %1847 = vrot.lane.b32.xlu0 %v4158_v38, %s3858_s30 }
 0x19f   : > { %v1717_v40 = vpop.f32.mrb[0].mxu0 }
 0x1a0   : > { %v1801_v41 = vadd.f32 %v1799_v30, %v1717_v40  ;;  %v1719_v42 = vpop.f32.mrb[1].mxu0 }
 0x1a1   : > { %v1802_v44 = vadd.f32 %v1799_v30, %v1719_v42  ;;  %v3593_v30 = vld [vmem:[%s4392_s4 + $0x40] sm:$0xff]  ;;  %v3600_v42 = vld [vmem:[%s4392_s4 + $0x58] sm:$0xf] }
 0x1a2   : > { %vm1804_vm12 = vcmp.ge.f32.partialorder %v1801_v41, 0.0  ;;  %v1807_v45 = vmul.f32 0.2, %v1801_v41 }
 0x1a3   : > { %vm1805_vm13 = vcmp.ge.f32.partialorder %v1802_v44, 0.0  ;;  %v1808_v47 = vmul.f32 0.2, %v1802_v44 }
 0x1a4   : > { %v1810_v48 = vsel %vm1804_vm12, %v1801_v41, %v1807_v45 }
 0x1a5   : > { %v4162_v49 = vmul.f32 %v1817_v43, %v1810_v48  ;;  %v1811_v50 = vsel %vm1805_vm13, %v1802_v44, %v1808_v47 }
 0x1a6   : > { %v4164_v51 = vmul.f32 %v1821_v46, %v1811_v50 }
 0x1a7   : > { %1843 = vrot.lane.b32.xlu1 %v4162_v49, %s3858_s30 }
 0x1a8   : > { %1834 = vrot.lane.b32.xlu0 %v4164_v51, %s3859_s8 }
 0x1ab   : > { %1845 = vrot.lane.b32.xlu1 %v4164_v51, %s3858_s30  ;;  %s3825_s30 = smul.u32 24, %s4397_s25 }
 0x1ac   : > { %2172 = vrot.lane.b32.xlu0 %v4162_v49, %s3860_s9 }
 0x1af   : > { %1832 = vrot.lane.b32.xlu1 %v4162_v49, %s3859_s8 }
 0x1b0   : > { %2176 = vrot.lane.b32.xlu0 %v4158_v38, %s3860_s9 }
 0x1b3   : > { %1836 = vrot.lane.b32.xlu1 %v4158_v38, %s3859_s8 }
 0x1b4   : > { %2350 = vrot.lane.b32.xlu0 %v4164_v51, %s3861_s10 }
 0x1b7   : > { %2174 = vrot.lane.b32.xlu1 %v4164_v51, %s3860_s9 }
 0x1b8   : > { %2693 = vrot.lane.b32.xlu0 %v4164_v51, %s3862_s11 }
 0x1bb   : > { %2348 = vrot.lane.b32.xlu1 %v4162_v49, %s3861_s10 }
 0x1bc   : > { %2691 = vrot.lane.b32.xlu0 %v4162_v49, %s3862_s11 }
 0x1bf   : > { %2352 = vrot.lane.b32.xlu1 %v4158_v38, %s3861_s10  ;;  %s286_s10 = scalar_lea.vmem %s4394_s6, %s3825_s30 }
 0x1c0   : > { %2871 = vrot.lane.b32.xlu0 %v4158_v38, %s3863_s12 }
 0x1c3   : > { %2695 = vrot.lane.b32.xlu1 %v4158_v38, %s3862_s11 }
 0x1c4   : > { %3045 = vrot.lane.b32.xlu0 %v4164_v51, %s3864_s13 }
 0x1c7   : > { %2869 = vrot.lane.b32.xlu1 %v4164_v51, %s3863_s12 }
 0x1c8   : > { %3043 = vrot.lane.b32.xlu0 %v4162_v49, %s3864_s13 }
 0x1cb   : > { %2867 = vrot.lane.b32.xlu1 %v4162_v49, %s3863_s12 }
 0x1cc   : > { %3223 = vrot.lane.b32.xlu0 %v4158_v38, %s3865_s14 }
 0x1cf   : > { %3047 = vrot.lane.b32.xlu1 %v4158_v38, %s3864_s13  ;;  %s291_s13 = scalar_lea.vmem %s4395_s7, %s3824_s26 }
 0x1d0   : > { %3404 = vperm.xlu0 %3845, %v3396_v52  }
 0x1d3   : > { %3221 = vrot.lane.b32.xlu1 %v4164_v51, %s3865_s14 }
 0x1d7   : > { %3219 = vrot.lane.b32.xlu1 %v4162_v49, %s3865_s14 }
 0x1db   : > { %3399 = vperm.xlu1 %3846, %v3395_v53  }
 0x202   : > { %v1848_v54 = vpop.permute.xlu0 %1847 }
 0x219   : > { %v1844_v55 = vpop.permute.xlu1 %1843 }
 0x21a   : > { %v1835_v56 = vpop.permute.xlu0 %1834  ;;  %v1851_v61 = vsel %vm318_vm1, %v1848_v54, %v1844_v55 }
 0x21d   : > { %v1846_v57 = vpop.permute.xlu1 %1845 }
 0x21e   : > { %v2173_v58 = vpop.permute.xlu0 %2172  ;;  %v1850_v59 = vsel %vm318_vm1, %v1844_v55, %v1846_v57  ;;  %v1849_v62 = vsel %vm318_vm1, %v1846_v57, %v1848_v54  ;;  %v3612_v54 = vld [vmem:[%s4392_s4 + $0x78] sm:$0xf]  ;;  %v3617_v55 = vld [vmem:[%s4392_s4 + $0x80] sm:$0xff]  ;;  %v3618_v57 = vld [vmem:[%s4392_s4 + $0x88] sm:$0xf] }
 0x21f   : > { %1862 = vmatprep.subr.mxu1 %v1850_v59 }
 0x220   : > { %1863 = vmatpush1.msra.mxu1 %v1851_v61 }
 0x221   : > { %3573 = vmatmul.mubr.msk.f32.vlgmr.msra.gmra.mrb[18].mxu1 %vm1855_vm14, %v3571_v60  ;;  %3715 = vmatprep.subr.mxu1 %v1849_v62  ;;  %v1833_v63 = vpop.permute.xlu1 %1832 }
 0x222   : > { %3716 = vmatpush3.msra.mxu1 %v1849_v62  ;;  %v1839_v1 = vsel %vm307_vm4, %v1833_v63, %v1835_v56  ;;  %1932 = vmatprep.mubr.f32.mxu1 %v3856_v0  ;;  %v2177_v3 = vpop.permute.xlu0 %2176 }
 0x223   : > { %2020 = vmatprep.subr.mxu1 %v1839_v1  ;;  %v2180_v14 = vsel %vm638_vm5, %v2177_v3, %v2173_v58 }
 0x225   : > { %3574 = vmatmul.mubr.msk.f32.gmra.mrb[20].mxu1 %vm1855_vm14, %v3572_v2  ;;  %v1837_v4 = vpop.permute.xlu1 %1836 }
 0x226   : > { %3717 = vmatprep.mubr.msk.f32.mxu1 %vm1855_vm14, %v3571_v60  ;;  %v1840_v5 = vsel %vm307_vm4, %v1837_v4, %v1833_v63  ;;  %v2351_v8 = vpop.permute.xlu0 %2350  ;;  %v1838_v10 = vsel %vm307_vm4, %v1835_v56, %v1837_v4 }
 0x229   : > { %3718 = vmatmul.mubr.msk.f32.vlgmr.msra.gmra.mrb[22].mxu1 %vm1855_vm14, %v3572_v2  ;;  %v2175_v9 = vpop.permute.xlu1 %2174 }
 0x22a   : > { %2021 = vmatpush1.msra.mxu1 %v1840_v5  ;;  %v2179_v11 = vsel %vm638_vm5, %v2173_v58, %v2175_v9  ;;  %2084 = vmatprep.mubr.f32.mxu1 %v3856_v0  ;;  %v2178_v16 = vsel %vm638_vm5, %v2175_v9, %v2177_v3  ;;  %v2694_v20 = vpop.permute.xlu0 %2693 }
 0x22b   : > { %3720 = vmatprep.subr.mxu1 %v1838_v10  ;;  %2190 = vmatprep.subr.mxu0 %v2179_v11 }
 0x22c   : > { %2191 = vmatpush1.msra.mxu0 %v2180_v14 }
 0x22d   : > { %3577 = vmatmul.mubr.msk.f32.vlgmr.msra.gmra.mrb[18].mxu1 %vm1855_vm14, %v1841_v12  ;;  %3583 = vmatmul.mubr.msk.f32.vlgmr.msra.gmra.mrb[2].mxu0 %vm1855_vm14, %v3581_v13  ;;  %v2349_v15 = vpop.permute.xlu1 %2348 }
 0x22e   : > { %3721 = vmatpush3.msra.mxu1 %v1838_v10  ;;  %v2355_v17 = vsel %vm806_vm6, %v2349_v15, %v2351_v8  ;;  %2090 = vmatprep.mubr.f32.mxu1 %v3856_v0  ;;  %v2692_v24 = vpop.permute.xlu0 %2691 }
 0x22f   : > { %3725 = vmatprep.subr.mxu1 %v2178_v16  ;;  %2366 = vmatprep.subr.mxu0 %v2355_v17  ;;  %v2698_v32 = vsel %vm1129_vm7, %v2692_v24, %v2694_v20 }
 0x230   : > { %2260 = vmatprep.mubr.f32.mxu0 %v3856_v0 }
 0x231   : > { %3578 = vmatmul.mubr.msk.f32.gmra.mrb[20].mxu1 %vm1855_vm14, %v1842_v18  ;;  %3584 = vmatmul.mubr.msk.f32.gmra.mrb[4].mxu0 %vm1855_vm14, %v3582_v19  ;;  %v2353_v21 = vpop.permute.xlu1 %2352 }
 0x232   : > { %v2356_v22 = vsel %vm806_vm6, %v2353_v21, %v2349_v15  ;;  %3722 = vmatprep.mubr.msk.f32.mxu1 %vm1855_vm14, %v1841_v12  ;;  %2430 = vmatprep.mubr.f32.mxu0 %v3856_v0  ;;  %v2354_v26 = vsel %vm806_vm6, %v2351_v8, %v2353_v21  ;;  %v2872_v31 = vpop.permute.xlu0 %2871 }
 0x233   : > { %2367 = vmatpush1.msra.mxu0 %v2356_v22 }
 0x234   : > { %2533 = vmatprep.subr.mxu0 %v4164_v51  ;;  %v3611_v51 = vld [vmem:[%s4392_s4 + $0x70] sm:$0xff] }
 0x235   : > { %3723 = vmatmul.mubr.msk.f32.vlgmr.msra.gmra.mrb[22].mxu1 %vm1855_vm14, %v1842_v18  ;;  %3589 = vmatmul.mubr.msk.f32.vlgmr.msra.gmra.mrb[2].mxu0 %vm1855_vm14, %v3587_v23  ;;  %v2696_v25 = vpop.permute.xlu1 %2695 }
 0x236   : > { %3726 = vmatpush3.msra.mxu1 %v2178_v16  ;;  %2534 = vmatpush1.msra.mxu0 %v4162_v49  ;;  %v2697_v27 = vsel %vm1129_vm7, %v2694_v20, %v2696_v25  ;;  %v3046_v36 = vpop.permute.xlu0 %3045  ;;  %v2699_v40 = vsel %vm1129_vm7, %v2696_v25, %v2692_v24  ;;  %v3606_v49 = vld [vmem:[%s4392_s4 + $0x68] sm:$0xf] }
 0x237   : > { %3730 = vmatprep.subr.mxu1 %v2354_v26  ;;  %2709 = vmatprep.subr.mxu0 %v2697_v27 }
 0x238   : > { %2436 = vmatprep.mubr.f32.mxu0 %v3856_v0  ;;  %3727 = vmatprep.mubr.msk.f32.mxu1 %vm1855_vm14, %v3581_v13 }
 0x239   : > { %3590 = vmatmul.mubr.msk.f32.gmra.mrb[4].mxu0 %vm1855_vm14, %v3588_v28  ;;  %v2870_v29 = vpop.permute.xlu1 %2869 }
 0x23a   : > { %2597 = vmatprep.mubr.f32.mxu0 %v3856_v0  ;;  %v2873_v34 = vsel %vm1297_vm8, %v2870_v29, %v2872_v31  ;;  %v3044_v43 = vpop.permute.xlu0 %3043 }
 0x23b   : > { %v3050_v45 = vsel %vm1465_vm9, %v3044_v43, %v3046_v36 }
 0x23d   : > { %3728 = vmatmul.mubr.msk.f32.vlgmr.msra.gmra.mrb[22].mxu1 %vm1855_vm14, %v3582_v19  ;;  %3595 = vmatmul.mubr.msk.f32.vlgmr.msra.gmra.mrb[2].mxu0 %vm1855_vm14, %v3593_v30  ;;  %v2868_v33 = vpop.permute.xlu1 %2867 }
 0x23e   : > { %3731 = vmatpush3.msra.mxu1 %v2354_v26  ;;  %2710 = vmatpush1.msra.mxu0 %v2698_v32  ;;  %v2874_v39 = vsel %vm1297_vm8, %v2868_v33, %v2870_v29  ;;  %v3224_v46 = vpop.permute.xlu0 %3223  ;;  %v2875_v47 = vsel %vm1297_vm8, %v2872_v31, %v2868_v33 }
 0x23f   : > { %3735 = vmatprep.subr.mxu1 %v4158_v38  ;;  %2885 = vmatprep.subr.mxu0 %v2873_v34 }
 0x240   : > { %2603 = vmatprep.mubr.f32.mxu0 %v3856_v0  ;;  %3732 = vmatprep.mubr.msk.f32.mxu1 %vm1855_vm14, %v3587_v23 }
 0x241   : > { %3596 = vmatmul.mubr.msk.f32.gmra.mrb[4].mxu0 %vm1855_vm14, %v3594_v35  ;;  %v3048_v6 = vpop.permute.xlu1 %3047 }
 0x242   : > { %2773 = vmatprep.mubr.f32.mxu0 %v3856_v0  ;;  %v3049_v41 = vsel %vm1465_vm9, %v3046_v36, %v3048_v6  ;;  %v3051_v53 = vsel %vm1465_vm9, %v3048_v6, %v3044_v43 }
 0x245   : > { %3733 = vmatmul.mubr.msk.f32.vlgmr.msra.gmra.mrb[22].mxu1 %vm1855_vm14, %v3588_v28  ;;  %3601 = vmatmul.mubr.msk.f32.vlgmr.msra.gmra.mrb[2].mxu0 %vm1855_vm14, %v3599_v37  ;;  %v3222_v44 = vpop.permute.xlu1 %3221 }
 0x246   : > { %3736 = vmatpush3.msra.mxu1 %v4158_v38  ;;  %2886 = vmatpush1.msra.mxu0 %v2874_v39  ;;  %v3605_v38 = vld [vmem:[%s4392_s4 + $0x60] sm:$0xff]  ;;  %v3225_v48 = vsel %vm1633_vm10, %v3222_v44, %v3224_v46 }
 0x247   : > { %3740 = vmatprep.subr.mxu1 %v2699_v40  ;;  %3061 = vmatprep.subr.mxu0 %v3049_v41 }
 0x248   : > { %2779 = vmatprep.mubr.f32.mxu0 %v3856_v0  ;;  %3737 = vmatprep.mubr.msk.f32.mxu1 %vm1855_vm14, %v3593_v30 }
 0x249   : > { %3602 = vmatmul.mubr.msk.f32.gmra.mrb[4].mxu0 %vm1855_vm14, %v3600_v42  ;;  %v3220_v50 = vpop.permute.xlu1 %3219 }
 0x24a   : > { %2949 = vmatprep.mubr.f32.mxu0 %v3856_v0  ;;  %v3226_v52 = vsel %vm1633_vm10, %v3220_v50, %v3222_v44  ;;  %v3227_v56 = vsel %vm1633_vm10, %v3224_v46, %v3220_v50 }
 0x24d   : > { %3738 = vmatmul.mubr.msk.f32.vlgmr.msra.gmra.mrb[22].mxu1 %vm1855_vm14, %v3594_v35  ;;  %3607 = vmatmul.mubr.msk.f32.vlgmr.msra.gmra.mrb[2].mxu0 %vm1855_vm14, %v3605_v38 }
 0x24e   : > { %3741 = vmatpush3.msra.mxu1 %v2699_v40  ;;  %3062 = vmatpush1.msra.mxu0 %v3050_v45 }
 0x24f   : > { %3745 = vmatprep.subr.mxu1 %v2875_v47  ;;  %3237 = vmatprep.subr.mxu0 %v3225_v48  ;;  %v3405_v9 = vpop.permute.xlu0 %3404 }
 0x250   : > { %2955 = vmatprep.mubr.f32.mxu0 %v3856_v0  ;;  %3742 = vmatprep.mubr.msk.f32.mxu1 %vm1855_vm14, %v3599_v37 }
 0x251   : > { %3608 = vmatmul.mubr.msk.f32.gmra.mrb[4].mxu0 %vm1855_vm14, %v3606_v49 }
 0x252   : > { %3125 = vmatprep.mubr.f32.mxu0 %v3856_v0 }
 0x255   : > { %3743 = vmatmul.mubr.msk.f32.vlgmr.msra.gmra.mrb[22].mxu1 %vm1855_vm14, %v3600_v42  ;;  %3613 = vmatmul.mubr.msk.f32.vlgmr.msra.gmra.mrb[2].mxu0 %vm1855_vm14, %v3611_v51 }
 0x256   : > { %3746 = vmatpush3.msra.mxu1 %v2875_v47  ;;  %3238 = vmatpush1.msra.mxu0 %v3226_v52 }
 0x257   : > { %3750 = vmatprep.subr.mxu1 %v3051_v53  ;;  %3131 = vmatprep.mubr.f32.mxu0 %v3856_v0 }
 0x258   : > { %3747 = vmatprep.mubr.msk.f32.mxu1 %vm1855_vm14, %v3605_v38 }
 0x259   : > { %3614 = vmatmul.mubr.msk.f32.gmra.mrb[4].mxu0 %vm1855_vm14, %v3612_v54 }
 0x25a   : > { %3301 = vmatprep.mubr.f32.mxu0 %v3856_v0  ;;  %v3400_v61 = vpop.permute.xlu1 %3399 }
 0x25d   : > { %3748 = vmatmul.mubr.msk.f32.vlgmr.msra.gmra.mrb[22].mxu1 %vm1855_vm14, %v3606_v49  ;;  %3619 = vmatmul.mubr.msk.f32.vlgmr.msra.gmra.mrb[2].mxu0 %vm1855_vm14, %v3617_v55 }
 0x25e   : > { %3751 = vmatpush3.msra.mxu1 %v3051_v53  ;;  %3307 = vmatprep.mubr.f32.mxu0 %v3856_v0 }
 0x25f   : > { %3755 = vmatprep.subr.mxu1 %v3227_v56  ;;  %3752 = vmatprep.mubr.msk.f32.mxu1 %vm1855_vm14, %v3611_v51 }
 0x261   : > { %3620 = vmatmul.mubr.msk.f32.gmra.mrb[4].mxu0 %vm1855_vm14, %v3618_v57 }
 0x265   : > { %3753 = vmatmul.mubr.msk.f32.vlgmr.msra.gmra.mrb[22].mxu1 %vm1855_vm14, %v3612_v54 }
 0x266   : > { %3756 = vmatpush3.msra.mxu1 %v3227_v56  ;;  %3757 = vmatprep.mubr.msk.f32.mxu1 %vm1855_vm14, %v3617_v55 }
 0x26d   : > { %3758 = vmatmul.mubr.msk.f32.vlgmr.msra.gmra.mrb[22].mxu1 %vm1855_vm14, %v3618_v57 }
 0x300   : > { %v2086_v7 = vpop.f32.mrb[18].mxu1 }
 0x301   : > { %v2088_v58 = vpop.f32.mrb[19].mxu1 }
 0x304   : > { %v2092_v59 = vpop.f32.mrb[20].mxu1 }
 0x305   : > { %v2094_v0 = vpop.f32.mrb[21].mxu1 }
 0x330   : > { %v3303_v60 = vpop.f32.mrb[2].mxu0 }
 0x331   : > { %v3760_v62 = vadd.f32 %v3303_v60, %v2086_v7  ;;  %v3305_v63 = vpop.f32.mrb[3].mxu0 }
 0x332   : > { %v3761_v1 = vadd.f32 %v3305_v63, %v2088_v58 }
 0x333   : > { %v3407_v2 = vadd.f32 %v3760_v62, %v3400_v61 }
 0x334   : > { %v3408_v3 = vadd.f32 %v3761_v1, %v3400_v61  ;;  %v3309_v4 = vpop.f32.mrb[4].mxu0 }
 0x335   : > { %3413 = vst [vmem:[%s286_s10] sm:$0xff] %v3407_v2  ;;  %v3762_v5 = vadd.f32 %v3309_v4, %v2092_v59  ;;  %v3311_v8 = vpop.f32.mrb[5].mxu0 }
 0x336   : > { %3414 = vst [vmem:[%s286_s10 + $0x8] sm:$0xff] %v3408_v3  ;;  %v3763_v10 = vadd.f32 %v3311_v8, %v2094_v0 }
 0x337   : > { %v3410_v11 = vadd.f32 %v3762_v5, %v3405_v9 }
 0x338   : > { %v3411_v12 = vadd.f32 %v3763_v10, %v3405_v9 }
 0x33a   : > { %v3418_v13 = vcombine.low %v3410_v11, %v3411_v12 }
 0x33c   : > { %3420 = vst [vmem:[%s291_s13] sm:$0xff] %v3418_v13 }
 0x340   : > { %v3759_v14 = vpop.f32.mrb[22].mxu1 }
 0x341   : > { %v3412_v15 = vadd.f32 %v3759_v14, %v3405_v9  ;;  %v3380_v16 = vpop.f32.mrb[23].mxu1 }
 0x342   : > { %v3409_v17 = vadd.f32 %v3400_v61, %v3380_v16 }
 0x343   : > { %3421 = vst [vmem:[%s291_s13 + $0x8] sm:$0xf] %v3412_v15 }
 0x344   : > { %3415 = vst [vmem:[%s286_s10 + $0x10] sm:$0xff] %v3409_v17 }
 0x345 PF: > { %s18_s24 = sadd.s32 1, %s3854_s24  }
 0x346   : > { %p15_p4 = scmp.ge.s32.totalorder %s18_s24, 4  }
 0x348   :  { %17 = sbr.rel (!%p15_p4) target bundleno = 1 (0x1), region = 102 }

</bundles_post_ra>
